<compile_context>
chip_gen: v7x
topology: tpu7x:2x2x1
jax: 0.10.0
libtpu: 0.0.40
codegen_flags: <defaults>
</compile_context>

<pallas_src>
import jax
import jax.numpy as jnp
from jax import lax
from jax.experimental import pallas as pl
from jax.experimental.pallas import tpu as pltpu

LN_EPS = 1e-5  # torch.nn.LayerNorm default


def _round_up(n, m):
    return (n + m - 1) // m * m


def _vmem_capacity_bytes():
    """Physical VMEM per core; conservative v7x default if the query fails."""
    try:
        cap = int(getattr(pltpu.get_tpu_info(), "vmem_capacity_bytes", 0))
        if cap > 0:
            return cap
    except Exception:
        pass
    return 64 << 20


def fold_layernorm_into_linear(gamma, beta, w, b, matmul_dtype=None):
    """Fold the LayerNorm affine into the Linear layer (hoisted out of the
    per-call path; do this once per weight set).

        (xn * g + b0) @ W + b  ==  xn @ (diag(g) W) + (b0 @ W + b)

    Returns (w_folded, b_folded): w_folded in `matmul_dtype` (default bf16 when
    W is f32 -- the MXU is bf16-native on v5e/v6e/v7x), b_folded in f32.
    """
    if matmul_dtype is None:
        matmul_dtype = (jnp.bfloat16 if jnp.dtype(w.dtype) == jnp.float32
                        else jnp.dtype(w.dtype))
    w32 = w.astype(jnp.float32)
    w_f = (gamma.astype(jnp.float32)[:, None] * w32).astype(matmul_dtype)
    b_f = (beta.astype(jnp.float32) @ w32 + b.astype(jnp.float32)).reshape(1, -1)
    return w_f, b_f


def _ln_linear(x_ref, w_ref, b_ref):
    """LayerNorm (affine folded into W/b) + Linear on the MXU; returns f32."""
    d = x_ref.shape[-1]
    x32 = x_ref[...].astype(jnp.float32)
    # One-pass statistics: var = E[x^2] - mean^2 (halves the XLU reductions).
    inv_d = 1.0 / d
    mean = jnp.sum(x32, axis=-1, keepdims=True) * inv_d
    var = jnp.sum(x32 * x32, axis=-1, keepdims=True) * inv_d - mean * mean
    var = jnp.maximum(var, 0.0)
    xn = (x32 - mean) * lax.rsqrt(var + LN_EPS)
    # bf16-friendly MXU operands, f32 accumulation.
    y = jnp.dot(xn.astype(w_ref.dtype), w_ref[...],
                preferred_element_type=jnp.float32)
    return y + b_ref[...]


def _kernel_resident(x_ref, w_ref, b_ref, o_ref):
    # x_ref: (TN, D); w_ref: (D, D) resident folded weight; b_ref: (1, D) f32.
    y = _ln_linear(x_ref, w_ref, b_ref)
    # dropout (eval mode => identity) + residual.  Re-read x_ref so the f32 x
    # copy inside _ln_linear does not stay live across the matmul.
    # TODO(synk): training-mode dropout would need pltpu.prng_* inside the kernel.
    o_ref[...] = (x_ref[...].astype(jnp.float32) + y).astype(o_ref.dtype)


def _kernel_wtiled(x_ref, xres_ref, w_ref, b_ref, o_ref):
    # x_ref: (TN, D) full row slab (for LN stats + matmul input);
    # xres_ref: (TN, TJ) residual tile; w_ref: (D, TJ); b_ref: (1, TJ) f32.
    y = _ln_linear(x_ref, w_ref, b_ref)
    o_ref[...] = (xres_ref[...].astype(jnp.float32) + y).astype(o_ref.dtype)


def normalized_residual_block(x, w_folded, b_folded, *, tn=None, tj=None,
                              vmem_budget_bytes=None):
    """y = x + dropout(Linear(LayerNorm(x))), eval-mode dropout.

    x: (B, S, D); (w_folded, b_folded): from fold_layernorm_into_linear.
    """
    B, S, D = x.shape
    assert w_folded.shape == (D, D) and b_folded.shape[-1] == D
    N = B * S
    x_bytes = jnp.dtype(x.dtype).itemsize
    w_bytes = jnp.dtype(w_folded.dtype).itemsize
    b_folded = b_folded.astype(jnp.float32).reshape(1, D)

    cap = _vmem_capacity_bytes()
    if vmem_budget_bytes is None:
        # ~96 MiB on v5e/v6e (128 MiB VMEM), ~48 MiB on v7x (64 MiB VMEM).
        vmem_budget_bytes = int(0.75 * cap)

    sub = max(8, 32 // x_bytes)             # sublane packing granularity
    mxu = 256                               # MXU tile of rows (multiple of 128 -> v5e OK)
    row_cap = min(2048, _round_up(N, sub))  # never slab more rows than exist

    def vmem_need(t, cj, w_resident):
        need = 2 * t * D * x_bytes                       # x slab, double-buffered
        need += 2 * t * cj * x_bytes                     # output slab, double-buffered
        need += (1 if w_resident else 2) * D * cj * w_bytes   # folded W
        need += (0 if w_resident else 2 * t * cj * x_bytes)   # residual tile (tiled path)
        need += 2 * cj * 4                               # folded bias (f32)
        need += 2 * t * D * 4                            # in-kernel f32 x / xn temporaries
        need += t * cj * 4                               # f32 matmul accumulator
        return need

    def best_tn(cj, w_resident):
        # Largest multiple of one MXU tile of rows that fits; grown to the cap.
        cands = list(range((row_cap // mxu) * mxu, mxu - 1, -mxu))
        if not cands:
            cands = [row_cap]               # tiny inputs (< one MXU tile of rows)
        for t in cands:
            if vmem_need(t, cj, w_resident) <= vmem_budget_bytes:
                return t
        return None

    # Output-column tile candidates: resident full W first; then 128-multiples
    # dividing D as the W-tiling fallback (large D / small VMEM, e.g. v7x).
    tj_cands = [D] + [c for c in (2048, 1024, 512, 256, 128) if c < D and D % c == 0]
    if tj is not None:
        assert D % tj == 0, "tj must divide the embedding dim"
        tj_cands = [tj]

    tn_eff, tj_eff = None, None
    for cj in tj_cands:
        t = tn if tn is not None else best_tn(cj, cj == D)
        if t is not None:
            tn_eff, tj_eff = t, cj
            break
    if tn_eff is None:                      # nothing fit: smallest config, let Mosaic try
        tj_eff = tj_cands[-1]
        tn_eff = min(row_cap, mxu)
    tn_eff = min(tn_eff, row_cap)
    w_resident = tj_eff == D

    # Pad rows so the grid covers N exactly (padded tail discarded below).
    Np = _round_up(N, tn_eff)
    x2 = x.reshape(N, D)
    if Np != N:
        x2 = jnp.pad(x2, ((0, Np - N), (0, 0)))

    n_i = Np // tn_eff
    n_j = D // tj_eff

    vmem_limit = int(min(cap - (4 << 20),
                         max(vmem_need(tn_eff, tj_eff, w_resident) + (8 << 20),
                             32 << 20)))

    cost = pl.CostEstimate(
        flops=2 * Np * D * D + 10 * Np * D * n_j,
        transcendentals=Np * n_j,  # one rsqrt per row per output-column tile
        bytes_accessed=(2 * Np * D * x_bytes
                        + (0 if w_resident else Np * D * x_bytes)
                        + D * D * w_bytes * (1 if w_resident else n_i)
                        + D * 4),
    )

    x_slab_spec = pl.BlockSpec((tn_eff, D), lambda i, j: (i, 0))
    out_spec = pl.BlockSpec((tn_eff, tj_eff), lambda i, j: (i, j))
    if w_resident:
        kernel = _kernel_resident
        in_specs = [
            x_slab_spec,
            pl.BlockSpec((D, D), lambda i, j: (0, 0),       # resident folded W
                         pipeline_mode=pl.Buffered(1)),
            pl.BlockSpec((1, D), lambda i, j: (0, 0),       # resident folded bias
                         pipeline_mode=pl.Buffered(1)),
        ]
        args = (x2, w_folded, b_folded)
    else:
        kernel = _kernel_wtiled
        in_specs = [
            x_slab_spec,
            pl.BlockSpec((tn_eff, tj_eff), lambda i, j: (i, j)),   # residual tile
            pl.BlockSpec((D, tj_eff), lambda i, j: (0, j)),        # W column tile
            pl.BlockSpec((1, tj_eff), lambda i, j: (0, j)),        # bias tile
        ]
        args = (x2, x2, w_folded, b_folded)

    out = pl.pallas_call(
        kernel,
        out_shape=jax.ShapeDtypeStruct((Np, D), x.dtype),
        grid_spec=pltpu.PrefetchScalarGridSpec(
            num_scalar_prefetch=0,
            grid=(n_i, n_j),
            in_specs=in_specs,
            out_specs=out_spec,
        ),
        compiler_params=pltpu.CompilerParams(
            # Row axis "parallel": v7x's two TensorCores split the row slabs
            # (near-neutral on single-TC v5e/v6e).  Column axis ordered so the
            # x slab is reused across consecutive W tiles.
            dimension_semantics=("parallel", "arbitrary"),
            vmem_limit_bytes=vmem_limit),
        cost_estimate=cost,
    )(*args)
    return out[:N].reshape(B, S, D)


def _reference(x, gamma, beta, w, b):
    xf = x.astype(jnp.float32)
    mean = jnp.mean(xf, axis=-1, keepdims=True)
    var = jnp.mean((xf - mean) ** 2, axis=-1, keepdims=True)
    xn = (xf - mean) * lax.rsqrt(var + LN_EPS) * gamma.astype(jnp.float32) \
        + beta.astype(jnp.float32)
    y = jnp.einsum("bsd,de->bse", xn, w.astype(jnp.float32)) + b.astype(jnp.float32)
    return (xf + y).astype(x.dtype)


if __name__ == "__main__":
    key = jax.random.PRNGKey(0)

    def run_case(B, S, D, matmul_dtype, tol, **kw):
        kx, kg, kbe, kw_, kb = jax.random.split(jax.random.fold_in(key, D), 5)
        x = jax.random.normal(kx, (B, S, D), dtype=jnp.float32)
        gamma = 1.0 + 0.1 * jax.random.normal(kg, (D,), dtype=jnp.float32)
        beta = 0.1 * jax.random.normal(kbe, (D,), dtype=jnp.float32)
        w = 0.02 * jax.random.normal(kw_, (D, D), dtype=jnp.float32)
        b = 0.02 * jax.random.normal(kb, (D,), dtype=jnp.float32)

        # The gamma/beta fold is hoisted: computed once per weight set, not per call.
        w_f, b_f = fold_layernorm_into_linear(gamma, beta, w, b,
                                              matmul_dtype=matmul_dtype)
        out = normalized_residual_block(x, w_f, b_f, **kw)
        out = jax.block_until_ready(out)

        ref = _reference(x, gamma, beta, w, b)
        assert out.shape == x.shape and out.dtype == x.dtype
        err = float(jnp.max(jnp.abs(out.astype(jnp.float32)
                                    - ref.astype(jnp.float32))))
        assert err < tol, (D, str(matmul_dtype), err)

    # 1) Resident-W path, full-f32 MXU operands (tight numerics check).
    run_case(2, 8, 128, jnp.float32, 2e-4)
    # 2) Resident-W path, default bf16 MXU operands (looser tolerance).
    run_case(2, 8, 128, None, 2e-2)
    # 3) W-tiled path (2nd grid axis over output columns), forced via tj/tn.
    run_case(2, 8, 256, None, 2e-2, tj=128, tn=16)

    print("KERNEL_OK")
</pallas_src>

<mosaic_0001>
module attributes {stable_mosaic.version = 11 : i64} {
  func.func @_kernel_resident(%arg0: i32, %arg1: i32, %arg2: memref<16x128xf32, #tpu.memory_space<vmem>>, %arg3: memref<128x128xf32, #tpu.memory_space<vmem>>, %arg4: memref<1x128xf32, #tpu.memory_space<vmem>>, %arg5: memref<16x128xf32, #tpu.memory_space<vmem>>) attributes {dimension_semantics = [#tpu.dimension_semantics<parallel>, #tpu.dimension_semantics<arbitrary>], iteration_bounds = array<i64: 1, 1>, scalar_prefetch = 0 : i64, scratch_operands = 0 : i64, tpu.core_type = #tpu.core_type<tc>, window_params = [{transform_indices = @transform_0, window_bounds = array<i64: 16, 128>}, {pipeline_mode = #tpu.pipeline_mode<synchronous>, transform_indices = @transform_1, window_bounds = array<i64: 128, 128>}, {pipeline_mode = #tpu.pipeline_mode<synchronous>, transform_indices = @transform_2, window_bounds = array<i64: 1, 128>}, {transform_indices = @transform_3, window_bounds = array<i64: 16, 128>}]} {
    %c0 = arith.constant 0 : index
    %c0_0 = arith.constant 0 : index
    %0 = vector.load %arg2[%c0, %c0_0] : memref<16x128xf32, #tpu.memory_space<vmem>>, vector<16x128xf32>
    %cst = arith.constant dense<0.000000e+00> : vector<16xf32>
    %1 = vector.multi_reduction <add>, %0, %cst [1] : vector<16x128xf32> to vector<16xf32>
    %2 = vector.shape_cast %1 : vector<16xf32> to vector<16x1xf32>
    %cst_1 = arith.constant 7.812500e-03 : f32
    %3 = vector.broadcast %cst_1 : f32 to vector<16x1xf32>
    %4 = arith.mulf %2, %3 : vector<16x1xf32>
    %5 = arith.mulf %0, %0 : vector<16x128xf32>
    %cst_2 = arith.constant dense<0.000000e+00> : vector<16xf32>
    %6 = vector.multi_reduction <add>, %5, %cst_2 [1] : vector<16x128xf32> to vector<16xf32>
    %7 = vector.shape_cast %6 : vector<16xf32> to vector<16x1xf32>
    %cst_3 = arith.constant 7.812500e-03 : f32
    %8 = vector.broadcast %cst_3 : f32 to vector<16x1xf32>
    %9 = arith.mulf %7, %8 : vector<16x1xf32>
    %10 = arith.mulf %4, %4 : vector<16x1xf32>
    %11 = arith.subf %9, %10 : vector<16x1xf32>
    %cst_4 = arith.constant 0.000000e+00 : f32
    %12 = vector.broadcast %cst_4 : f32 to vector<16x1xf32>
    %13 = arith.maximumf %11, %12 : vector<16x1xf32>
    %14 = vector.broadcast %4 : vector<16x1xf32> to vector<16x128xf32>
    %15 = arith.subf %0, %14 : vector<16x128xf32>
    %cst_5 = arith.constant 9.99999974E-6 : f32
    %16 = vector.broadcast %cst_5 : f32 to vector<16x1xf32>
    %17 = arith.addf %13, %16 : vector<16x1xf32>
    %18 = math.rsqrt %17 : vector<16x1xf32>
    %19 = vector.broadcast %18 : vector<16x1xf32> to vector<16x128xf32>
    %20 = arith.mulf %15, %19 : vector<16x128xf32>
    %c0_6 = arith.constant 0 : index
    %c0_7 = arith.constant 0 : index
    %21 = vector.load %arg3[%c0_6, %c0_7] : memref<128x128xf32, #tpu.memory_space<vmem>>, vector<128x128xf32>
    %cst_8 = arith.constant dense<0.000000e+00> : vector<16x128xf32>
    %22 = tpu.matmul %20, %21, %cst_8 {dimension_numbers = #tpu.dot_dimension_numbers<[1], [0], [0], [1], [0, 0, 1, 1], [], []>} : vector<16x128xf32>, vector<128x128xf32>, vector<16x128xf32> -> vector<16x128xf32>
    %c0_9 = arith.constant 0 : index
    %c0_10 = arith.constant 0 : index
    %23 = vector.load %arg4[%c0_9, %c0_10] : memref<1x128xf32, #tpu.memory_space<vmem>>, vector<1x128xf32>
    %24 = vector.broadcast %23 : vector<1x128xf32> to vector<16x128xf32>
    %25 = arith.addf %22, %24 : vector<16x128xf32>
    %c0_11 = arith.constant 0 : index
    %c0_12 = arith.constant 0 : index
    %26 = vector.load %arg2[%c0_11, %c0_12] : memref<16x128xf32, #tpu.memory_space<vmem>>, vector<16x128xf32>
    %27 = arith.addf %26, %25 : vector<16x128xf32>
    %c0_13 = arith.constant 0 : index
    %c0_14 = arith.constant 0 : index
    %28 = vector.load %arg5[%c0_13, %c0_14] : memref<16x128xf32, #tpu.memory_space<vmem>>, vector<16x128xf32>
    tpu.vector_store %arg5[%c0_13, %c0_14], %27 {strides = array<i32>} : memref<16x128xf32, #tpu.memory_space<vmem>>, vector<16x128xf32>,
    return
  }
  func.func @transform_0(%arg0: i32, %arg1: i32) -> (i32, i32) {
    %c0_i32 = arith.constant 0 : i32
    %c0_i32_0 = arith.constant 0 : i32
    return %arg0, %c0_i32 : i32, i32
  }
  func.func @transform_1(%arg0: i32, %arg1: i32) -> (i32, i32) {
    %c0_i32 = arith.constant 0 : i32
    %c0_i32_0 = arith.constant 0 : i32
    %c0_i32_1 = arith.constant 0 : i32
    return %c0_i32, %c0_i32_0 : i32, i32
  }
  func.func @transform_2(%arg0: i32, %arg1: i32) -> (i32, i32) {
    %c0_i32 = arith.constant 0 : i32
    %c0_i32_0 = arith.constant 0 : i32
    %c0_i32_1 = arith.constant 0 : i32
    return %c0_i32, %c0_i32_0 : i32, i32
  }
  func.func @transform_3(%arg0: i32, %arg1: i32) -> (i32, i32) {
    %c0_i32 = arith.constant 0 : i32
    return %arg0, %arg1 : i32, i32
  }
}

</mosaic_0001>

<bundles_post_ra>
// kernel: tpu_custom_call.1
= control target key start
LH: loop header
LB: loop body
LE: loop exit
PB: predicated region body
PF: predicated region fallthrough
CT: control target
= control target key end

     0   :  { %8 = vsyncpa [#allocation3], 0  ;;  %s447_s0 = inlined_call_operand.hbm [shape: f32[16,128], index: 0, kind: input, shape index: {}]   ;;  %s448_s1 = inlined_call_operand.hbm [shape: f32[128,128], index: 1, kind: input, shape index: {}]   ;;  %s449_s2 = inlined_call_operand.vmem [shape: f32[1,128], index: 2, kind: input, shape index: {}]   ;;  %s450_s3 = inlined_call_operand.hbm [shape: f32[16,128], index: 3, kind: output, shape index: {}]  }
   0x1   :  { %9 = vsyncpa [#allocation6], 0 }
   0x2   :  { %10 = vsyncpa [#allocation4], 0  ;;  %s360_s12 = smov [#allocation2]   ;;  %s288_s16 = scalar_lea.hbm %s447_s0, 256 }
   0x3   :  { %s16_s13 = sshll.u32 %s360_s12, 4  ;;  %p289_p0 = scmp.ne.s32.totalorder %s447_s0, %s288_s16  ;;  %s17_s13 = int_to_ptr.vmem [resolvable:$true] %s16_s13 }
   0x4   :  { %p292_p1 = scmp.lt.u32.totalorder %s288_s16, %s447_s0 }
   0x6   :  { %p294_p2 = pnand %p292_p1, %p289_p0 }
   0x8   :  { %297 = shalt.err (!%p294_p2)
}
   0x9   :  { %s298_s21 = scalar_lea.vmem %s17_s13, 256  ;;  %p303_p4 = scmp.lt.s32.totalorder %s17_s13, %s17_s13 }
   0xa   :  { %p299_p3 = scmp.ne.s32.totalorder %s17_s13, %s298_s21  ;;  %p304_p5 = scmp.lt.s32.totalorder %s298_s21, %s298_s21 }
   0xc   :  { %p305_p6 = por %p304_p5, %p303_p4 }
   0xe   :  { %p306_p7 = pnand %p305_p6, %p299_p3 }
  0x10   :  { %309 = shalt.err (!%p306_p7)
}
  0x11   :  { %s361_s22 = smov 128   ;;  %s362_s23 = smov 8  }
  0x12   :  { %22 = dma.hbm_to_vmem [thread:$0]  %s447_s0, 256, %s17_s13, [#allocation3], %s361_s22, %s361_s22, %s362_s23  }
  0x13   :  { %s363_s26 = smov [#allocation5]   ;;  %s310_s30 = scalar_lea.hbm %s448_s1, 2048 }
  0x14   :  { %s28_s27 = sshll.u32 %s363_s26, 4  ;;  %p311_p8 = scmp.ne.s32.totalorder %s448_s1, %s310_s30  ;;  %s29_s27 = int_to_ptr.vmem [resolvable:$true] %s28_s27 }
  0x15   :  { %p314_p9 = scmp.lt.u32.totalorder %s310_s30, %s448_s1 }
  0x17   :  { %p316_p10 = pnand %p314_p9, %p311_p8 }
  0x19   :  { %319 = shalt.err (!%p316_p10)
}
  0x1a   :  { %s320_s8 = scalar_lea.vmem %s29_s27, 2048  ;;  %p325_p12 = scmp.lt.s32.totalorder %s29_s27, %s29_s27 }
  0x1b   :  { %p321_p11 = scmp.ne.s32.totalorder %s29_s27, %s320_s8  ;;  %p326_p13 = scmp.lt.s32.totalorder %s320_s8, %s320_s8 }
  0x1d   :  { %p327_p0 = por %p326_p13, %p325_p12 }
  0x1f   :  { %p328_p1 = pnand %p327_p0, %p321_p11 }
  0x21   :  { %331 = shalt.err (!%p328_p1)
}
  0x22   :  { %34 = dma.hbm_to_vmem [thread:$0]  %s448_s1, 2048, %s29_s27, [#allocation6], %s361_s22, %s361_s22, %s362_s23  }
  0x23   :  { %354 = dma.done.wait [#allocation3], 256  }
  0x24   :  { %355 = vsyncadd [#allocation3], 4294967040 }
  0x25   :  { %356 = dma.done.wait [#allocation6], 2048  }
  0x26   :  { %357 = vsyncadd [#allocation6], 4294965248  ;;  %v415_v0 = vld [vmem:[#allocation2] sm:$0xff]  ;;  %v417_v1 = vld [vmem:[#allocation2 + $0x8] sm:$0xff]  ;;  %s364_s11 = smov [#allocation7]  }
  0x27   :  { %v73_v2 = vld [vmem:[#allocation5] sm:$0xff]  ;;  %45 = vadd.xlane.f32.xlu0 %v415_v0  ;;  %v51_v3 = vmul.f32 %v415_v0, %v415_v0  ;;  %v74_v4 = vld [vmem:[#allocation5 + $0x8] sm:$0xff]  ;;  %v75_v5 = vld [vmem:[#allocation5 + $0x10] sm:$0xff]  ;;  %v52_v9 = vmul.f32 %v417_v1, %v417_v1  ;;  %s180_s12 = sshll.u32 %s364_s11, 4  ;;  %s181_s12 = int_to_ptr.vmem [resolvable:$true] %s180_s12 }
  0x28   :  { %v76_v6 = vld [vmem:[#allocation5 + $0x18] sm:$0xff]  ;;  %v247_v7 = vpack.c.bf16 %v74_v4, %v73_v2  ;;  %v77_v10 = vld [vmem:[#allocation5 + $0x20] sm:$0xff]  ;;  %v78_v11 = vld [vmem:[#allocation5 + $0x28] sm:$0xff]  ;;  %s332_s13 = scalar_lea.vmem %s181_s12, 256  ;;  %p337_p3 = scmp.lt.s32.totalorder %s181_s12, %s181_s12 }
  0x29   :  { %v251_v8 = vpack.c.bf16 %v76_v6, %v75_v5  ;;  %53 = vadd.xlane.f32.xlu1 %v51_v3  ;;  %v255_v12 = vpack.c.bf16 %v78_v11, %v77_v10  ;;  %v79_v13 = vld [vmem:[#allocation5 + $0x30] sm:$0xff]  ;;  %v80_v14 = vld [vmem:[#allocation5 + $0x38] sm:$0xff]  ;;  %v81_v16 = vld [vmem:[#allocation5 + $0x40] sm:$0xff]  ;;  %p333_p2 = scmp.ne.s32.totalorder %s181_s12, %s332_s13  ;;  %p338_p4 = scmp.lt.s32.totalorder %s332_s13, %s332_s13 }
  0x2a   :  { %248 = vmatprep.subr.bf16.mxu0 %v247_v7  ;;  %v259_v15 = vpack.c.bf16 %v80_v14, %v79_v13  ;;  %v82_v17 = vld [vmem:[#allocation5 + $0x48] sm:$0xff]  ;;  %v83_v19 = vld [vmem:[#allocation5 + $0x50] sm:$0xff]  ;;  %v84_v20 = vld [vmem:[#allocation5 + $0x58] sm:$0xff] }
  0x2b   :  { %47 = vadd.xlane.f32.xlu0 %v417_v1  ;;  %250 = vmatpush3.bf16.msra.mxu0 %v247_v7  ;;  %v263_v18 = vpack.c.bf16 %v82_v17, %v81_v16  ;;  %v267_v21 = vpack.c.bf16 %v84_v20, %v83_v19  ;;  %v85_v22 = vld [vmem:[#allocation5 + $0x60] sm:$0xff]  ;;  %v86_v23 = vld [vmem:[#allocation5 + $0x68] sm:$0xff]  ;;  %v87_v24 = vld [vmem:[#allocation5 + $0x70] sm:$0xff]  ;;  %p339_p5 = por %p338_p4, %p337_p3 }
  0x2c   :  { %252 = vmatprep.subr.bf16.mxu0 %v251_v8  ;;  %v271_v25 = vpack.c.bf16 %v86_v23, %v85_v22  ;;  %v88_v26 = vld [vmem:[#allocation5 + $0x78] sm:$0xff]  ;;  %v193_v50 = vld [vmem:[%s449_s2] ss:$0 sm:$0xff] }
  0x2d   :  { %55 = vadd.xlane.f32.xlu1 %v52_v9  ;;  %v275_v27 = vpack.c.bf16 %v88_v26, %v87_v24  ;;  %p340_p6 = pnand %p339_p5, %p333_p2 }
  0x2f   :  { %254 = vmatpush3.bf16.msra.mxu0 %v251_v8 }
  0x30   :  { %256 = vmatprep.subr.bf16.mxu0 %v255_v12 }
  0x33   :  { %258 = vmatpush3.bf16.msra.mxu0 %v255_v12 }
  0x34   :  { %260 = vmatprep.subr.bf16.mxu0 %v259_v15 }
  0x37   :  { %262 = vmatpush3.bf16.msra.mxu0 %v259_v15 }
  0x38   :  { %264 = vmatprep.subr.bf16.mxu0 %v263_v18 }
  0x3b   :  { %266 = vmatpush3.bf16.msra.mxu0 %v263_v18 }
  0x3c   :  { %268 = vmatprep.subr.bf16.mxu0 %v267_v21 }
  0x3f   :  { %270 = vmatpush3.bf16.msra.mxu0 %v267_v21 }
  0x40   :  { %272 = vmatprep.subr.bf16.mxu0 %v271_v25 }
  0x43   :  { %274 = vmatpush3.bf16.msra.mxu0 %v271_v25 }
  0x44   :  { %276 = vmatprep.subr.bf16.mxu0 %v275_v27 }
  0x47   :  { %278 = vmatpush3.bf16.msra.mxu0 %v275_v27 }
  0xb4   :  { %v46_v28 = vpop.xlane.xlu0 %45 }
  0xb5   :  { %v49_v29 = vmul.f32 0.0078125, %v46_v28 }
  0xb6   :  { %v54_v30 = vpop.xlane.xlu1 %53 }
  0xb7   :  { %v59_v31 = vmul.f32 %v49_v29, %v49_v29  ;;  %v57_v32 = vmul.f32 0.0078125, %v54_v30  ;;  %v65_v44 = vsub.f32 %v415_v0, %v49_v29 }
  0xb8   :  { %v48_v33 = vpop.xlane.xlu0 %47 }
  0xb9   :  { %v61_v34 = vsub.f32 %v57_v32, %v59_v31  ;;  %v50_v35 = vmul.f32 0.0078125, %v48_v33 }
  0xba   :  { %v56_v36 = vpop.xlane.xlu1 %55 }
  0xbb   :  { %v63_v37 = vmax.f32 %v61_v34, 0.0  ;;  %v60_v38 = vmul.f32 %v50_v35, %v50_v35  ;;  %v58_v39 = vmul.f32 0.0078125, %v56_v36  ;;  %v66_v47 = vsub.f32 %v417_v1, %v50_v35 }
  0xbd   :  { %v67_v40 = vadd.f32 1e-05, %v63_v37  ;;  %v62_v41 = vsub.f32 %v58_v39, %v60_v38 }
  0xbf   :  { %284 = vrsqrt.f32 %v67_v40  ;;  %v64_v42 = vmax.f32 %v62_v41, 0.0 }
  0xc1   :  { %v68_v43 = vadd.f32 1e-05, %v64_v42 }
  0xc3   :  { %286 = vrsqrt.f32 %v68_v43 }
  0xc9   :  { %v285_v45 = vpop.eup %284 }
  0xca   :  { %v71_v46 = vmul.f32 %v285_v45, %v65_v44 }
  0xcc   :  { %244 = vmatprep.mubr.f32.mxu0 %v71_v46 }
  0xcd   :  { %v287_v48 = vpop.eup %286 }
  0xce   :  { %v72_v49 = vmul.f32 %v287_v48, %v66_v47 }
  0xd0   :  { %245 = vmatmul.mubr.f32.vlgmr.msra.gmra.mrb[0].mxu0 %v72_v49 }
 0x1a3   :  { %v246_v51 = vpop.f32.mrb[0].mxu0 }
 0x1a4   :  { %v168_v52 = vadd.f32 %v246_v51, %v193_v50  ;;  %v162_v53 = vpop.f32.mrb[1].mxu0 }
 0x1a5   :  { %v163_v54 = vadd.f32 %v193_v50, %v162_v53 }
 0x1a6   :  { %v172_v55 = vadd.f32 %v168_v52, %v417_v1 }
 0x1a7   :  { %v171_v56 = vadd.f32 %v163_v54, %v415_v0 }
 0x1a8   :  { %174 = vst [vmem:[#allocation7 + $0x8] sm:$0xff] %v172_v55 }
 0x1a9   :  { %173 = vst [vmem:[#allocation7] sm:$0xff] %v171_v56 }
 0x1aa   :  { %343 = shalt.err (!%p340_p6)
}
 0x1ab   :  { %s344_s15 = scalar_lea.hbm %s450_s3, 256 }
 0x1ac   :  { %p345_p7 = scmp.ne.s32.totalorder %s450_s3, %s344_s15  ;;  %p348_p8 = scmp.lt.u32.totalorder %s344_s15, %s450_s3 }
 0x1ae   :  { %p350_p9 = pnand %p348_p8, %p345_p7 }
 0x1b0   :  { %353 = shalt.err (!%p350_p9)
}
 0x1b1   :  { %186 = dma.vmem_to_hbm [thread:$0]  %s181_s12, 256, %s450_s3, [#allocation4], %s361_s22, %s361_s22, %s362_s23  }
 0x1b2   :  { %358 = dma.done.wait [#allocation4], 256  }
 0x1b3   :  { %359 = vsyncadd [#allocation4], 4294967040 }
 0x1b4   :  { %190 = vsyncpa [#allocation3], 1 }
 0x1b5   :  { %191 = vsyncpa [#allocation6], 1 }
 0x1b6   :  { %192 = vsyncpa [#allocation4], 1 }

</bundles_post_ra>
